<compile_context>
chip_gen: v7x
topology: tpu7x:2x2x1
jax: 0.10.0
libtpu: 0.0.40
codegen_flags: <defaults>
</compile_context>

<pallas_src>
import functools

import jax
import jax.numpy as jnp
from jax import lax
from jax.experimental import pallas as pl
from jax.experimental.pallas import tpu as pltpu


def _self_attention_kernel(x_ref, wk_ref, bk_ref, wqv_ref, bqv_ref,
                           wo_ref, bo_ref, gamma_ref, o_ref, k_s,
                           *, tile_j, kpad):
    jt = pl.program_id(1)
    nj = pl.num_programs(1)

    x_b = x_ref.at[0]          # (HW, C) view of this batch element (no load)
    o_b = o_ref.at[0]          # (HW, C) resident output block == accumulator

    # ---- once per batch element: zero the accumulator and project k (row- ----
    # ---- chunked, so no huge one-shot (HW, C) temporary / vreg spill)     ----
    @pl.when(jt == 0)
    def _():
        o_b[...] = jnp.zeros(o_ref.shape[1:], o_ref.dtype)

        def proj_k(t, carry):
            r = pl.multiple_of(t * tile_j, tile_j)
            x_t = x_b[pl.ds(r, tile_j), :].astype(jnp.bfloat16)        # (tj, C)
            k_t = jnp.dot(x_t, wk_ref[...],
                          preferred_element_type=jnp.float32) + bk_ref[...]
            k_s[pl.ds(r, tile_j), :] = k_t.astype(jnp.bfloat16)        # (tj, kpad)
            return carry

        lax.fori_loop(0, nj, proj_k, 0)

    # ---- per tile of attention rows (reduction axis of the output) ----------
    off = pl.multiple_of(jt * tile_j, tile_j)
    x_j = x_b[pl.ds(off, tile_j), :].astype(jnp.bfloat16)              # (tj, C)

    # fused, lane-aligned q (padded to kpad lanes) + v projection for this tile
    qv = jnp.dot(x_j, wqv_ref[...],
                 preferred_element_type=jnp.float32) + bqv_ref[...]     # (tj, kpad+C)
    q_j = qv[:, :kpad].astype(jnp.bfloat16)                             # (tj, kpad)
    v_j = qv[:, kpad:]                                                  # (tj, C) f32

    # logits[j, p] = <q_j, k_p>   (q @ k^T; zero pad lanes contribute nothing)
    logits = lax.dot_general(q_j, k_s[...], (((1,), (1,)), ((), ())),
                             preferred_element_type=jnp.float32)        # (tj, HW)
    m = jnp.max(logits, axis=-1, keepdims=True)
    e = jnp.exp(logits - m)                                             # f32 exp
    l = jnp.sum(e, axis=-1, keepdims=True)

    # Fold the softmax normalization into the small (tj, C) operand instead of
    # rescaling the (tj, HW) matrix: attn[j,p]*v[j,c] == e[j,p]*(v[j,c]/l[j]).
    v_scaled = (v_j * pl.reciprocal(l, approx=True)).astype(jnp.bfloat16)
    p = e.astype(jnp.bfloat16)

    # out[p, c] += sum_j e[j, p] * v_scaled[j, c]   (e^T @ v, no transpose op)
    o_b[...] += lax.dot_general(p, v_scaled, (((0,), (0,)), ((), ())),
                                preferred_element_type=jnp.float32)

    # ---- finalize: output 1x1 conv + gamma-scaled residual, row-chunked ------
    @pl.when(jt == nj - 1)
    def _():
        def final_chunk(t, carry):
            r = pl.multiple_of(t * tile_j, tile_j)
            av_t = o_b[pl.ds(r, tile_j), :].astype(jnp.bfloat16)        # (tj, C)
            out_t = jnp.dot(av_t, wo_ref[...],
                            preferred_element_type=jnp.float32) + bo_ref[...]
            o_b[pl.ds(r, tile_j), :] = (gamma_ref[0] * out_t
                                        + x_b[pl.ds(r, tile_j), :])     # f32 residual
            return carry

        lax.fori_loop(0, nj, final_chunk, 0)


def self_attention_pallas(x_nchw, params, *, tile_j=None,
                          vmem_limit_bytes=48 * 1024 * 1024):
    """x_nchw: (B, C, H, W) float32. params: 1x1-conv weights/biases + gamma."""
    B, C, H, W = x_nchw.shape
    HW = H * W
    Cq = params["wq"].shape[0]                       # channels // 8
    kpad = max(128, ((Cq + 127) // 128) * 128)       # lane-align q/k channel dim

    if tile_j is None:
        # 512 suits v5e/v6e (128 MiB VMEM); use 256 on v7x (64 MiB physical).
        tile_j = min(HW, 512)
    assert HW % tile_j == 0, (HW, tile_j)
    assert tile_j % 8 == 0, tile_j                   # sublane tile for slices
    nj = HW // tile_j

    # NCHW -> (B, HW, C)   (HW index = h * W + w, matching torch's .view)
    x_flat = jnp.transpose(x_nchw, (0, 2, 3, 1)).reshape(B, HW, C).astype(jnp.float32)

    # conv weights (Cout, Cin, 1, 1) -> (Cin, Cout); q/k zero-padded to `kpad`
    # output lanes (identical logits); q & v fused for one per-tile matmul.
    wt = lambda w: jnp.transpose(w[:, :, 0, 0], (1, 0))
    pad_cols = lambda w: jnp.pad(w, ((0, 0), (0, kpad - w.shape[1])))
    pad_vec = lambda b: jnp.pad(b, (0, kpad - b.shape[0]))

    w_k = pad_cols(wt(params["wk"])).astype(jnp.bfloat16)               # (C, kpad)
    b_k = pad_vec(params["bk"]).reshape(1, kpad).astype(jnp.float32)
    w_qv = jnp.concatenate([pad_cols(wt(params["wq"])), wt(params["wv"])],
                           axis=1).astype(jnp.bfloat16)                 # (C, kpad+C)
    b_qv = jnp.concatenate([pad_vec(params["bq"]), params["bv"]]
                           ).reshape(1, kpad + C).astype(jnp.float32)
    w_o = wt(params["wo"]).astype(jnp.bfloat16)                         # (C, C)
    b_o = params["bo"].reshape(1, C).astype(jnp.float32)
    gamma = params["gamma"].reshape(1).astype(jnp.float32)              # SMEM scalar

    kernel = functools.partial(_self_attention_kernel, tile_j=tile_j, kpad=kpad)

    out_flat = pl.pallas_call(
        kernel,
        out_shape=jax.ShapeDtypeStruct((B, HW, C), jnp.float32),
        grid_spec=pltpu.PrefetchScalarGridSpec(
            num_scalar_prefetch=0,
            grid=(B, nj),
            in_specs=[
                pl.BlockSpec((1, HW, C), lambda b, j: (b, 0, 0)),       # x (per batch)
                pl.BlockSpec((C, kpad), lambda b, j: (0, 0)),           # W_k (padded)
                pl.BlockSpec((1, kpad), lambda b, j: (0, 0)),           # b_k
                pl.BlockSpec((C, kpad + C), lambda b, j: (0, 0)),       # fused W_qv
                pl.BlockSpec((1, kpad + C), lambda b, j: (0, 0)),       # fused b_qv
                pl.BlockSpec((C, C), lambda b, j: (0, 0)),              # W_o
                pl.BlockSpec((1, C), lambda b, j: (0, 0)),              # b_o
                pl.BlockSpec(memory_space=pltpu.MemorySpace.SMEM),      # gamma
            ],
            # Output block index constant over j -> VMEM-resident accumulator.
            out_specs=pl.BlockSpec((1, HW, C), lambda b, j: (b, 0, 0)),
            scratch_shapes=[
                pltpu.VMEM((HW, kpad), jnp.bfloat16),   # k (resident per batch)
            ],
        ),
        compiler_params=pltpu.CompilerParams(
            dimension_semantics=("parallel", "arbitrary"),
            vmem_limit_bytes=vmem_limit_bytes,          # < v7x 64 MiB physical
        ),
    )(x_flat, w_k, b_k, w_qv, b_qv, w_o, b_o, gamma)

    # (B, HW, C) -> NCHW
    return jnp.transpose(out_flat.reshape(B, H, W, C), (0, 3, 1, 2))


def self_attention_ref(x, params):
    """Pure-JAX f32 reference mirroring the PyTorch forward (NCHW)."""
    B, C, H, W = x.shape
    HW = H * W
    conv1x1 = lambda x, w, b: (
        jnp.einsum("oc,bchw->bohw", w[:, :, 0, 0], x) + b[None, :, None, None])
    q = conv1x1(x, params["wq"], params["bq"]).reshape(B, -1, HW).transpose(0, 2, 1)
    k = conv1x1(x, params["wk"], params["bk"]).reshape(B, -1, HW)
    v = conv1x1(x, params["wv"], params["bv"]).reshape(B, -1, HW)
    attn = jax.nn.softmax(jnp.einsum("bik,bkj->bij", q, k), axis=-1)
    av = jnp.einsum("bcj,bji->bci", v, attn).reshape(B, C, H, W)
    out = conv1x1(av, params["wo"], params["bo"])
    return params["gamma"][0] * out + x


if __name__ == "__main__":
    B, C, H, W = 2, 32, 8, 8
    Cq = C // 8

    key = jax.random.PRNGKey(0)
    ks = jax.random.split(key, 10)
    params = {
        "wq": jax.random.normal(ks[0], (Cq, C, 1, 1), jnp.float32) * 0.1,
        "bq": jax.random.normal(ks[1], (Cq,), jnp.float32) * 0.1,
        "wk": jax.random.normal(ks[2], (Cq, C, 1, 1), jnp.float32) * 0.1,
        "bk": jax.random.normal(ks[3], (Cq,), jnp.float32) * 0.1,
        "wv": jax.random.normal(ks[4], (C, C, 1, 1), jnp.float32) * 0.1,
        "bv": jax.random.normal(ks[5], (C,), jnp.float32) * 0.1,
        "wo": jax.random.normal(ks[6], (C, C, 1, 1), jnp.float32) * 0.1,
        "bo": jax.random.normal(ks[7], (C,), jnp.float32) * 0.1,
        # PyTorch init is zeros(1); nonzero so the attention path is exercised.
        "gamma": jnp.array([0.5], jnp.float32),
    }
    x = jax.random.normal(ks[8], (B, C, H, W), jnp.float32)

    # tile_j=16 -> 4 reduction steps per batch element: exercises the streamed
    # accumulation + chunked projection/finalize paths even at this small HW=64.
    out = jax.block_until_ready(self_attention_pallas(x, params, tile_j=16))
    ref = jax.block_until_ready(self_attention_ref(x, params))

    assert out.shape == (B, C, H, W)
    # bf16 MXU operands + approx reciprocal vs f32 reference -> looser tolerance.
    assert jnp.allclose(out, ref, atol=3e-2, rtol=3e-2), \
        f"max abs err {jnp.max(jnp.abs(out - ref))}"
    print("KERNEL_OK")
</pallas_src>

<mosaic_0001>
module attributes {stable_mosaic.version = 11 : i64} {
  func.func @_self_attention_kernel(%arg0: i32, %arg1: i32, %arg2: memref<1x64x32xf32, #tpu.memory_space<vmem>>, %arg3: memref<32x128xbf16, #tpu.memory_space<vmem>>, %arg4: memref<1x128xf32, #tpu.memory_space<vmem>>, %arg5: memref<32x160xbf16, #tpu.memory_space<vmem>>, %arg6: memref<1x160xf32, #tpu.memory_space<vmem>>, %arg7: memref<32x32xbf16, #tpu.memory_space<vmem>>, %arg8: memref<1x32xf32, #tpu.memory_space<vmem>>, %arg9: memref<1xf32, #tpu.memory_space<smem>>, %arg10: memref<1x64x32xf32, #tpu.memory_space<vmem>>, %arg11: memref<64x128xbf16, #tpu.memory_space<vmem>>) attributes {dimension_semantics = [#tpu.dimension_semantics<parallel>, #tpu.dimension_semantics<arbitrary>], iteration_bounds = array<i64: 2, 4>, scalar_prefetch = 0 : i64, scratch_operands = 1 : i64, tpu.core_type = #tpu.core_type<tc>, window_params = [{transform_indices = @transform_0, window_bounds = array<i64: 1, 64, 32>}, {pipeline_mode = #tpu.pipeline_mode<synchronous>, transform_indices = @transform_1, window_bounds = array<i64: 32, 128>}, {pipeline_mode = #tpu.pipeline_mode<synchronous>, transform_indices = @transform_2, window_bounds = array<i64: 1, 128>}, {pipeline_mode = #tpu.pipeline_mode<synchronous>, transform_indices = @transform_3, window_bounds = array<i64: 32, 160>}, {pipeline_mode = #tpu.pipeline_mode<synchronous>, transform_indices = @transform_4, window_bounds = array<i64: 1, 160>}, {pipeline_mode = #tpu.pipeline_mode<synchronous>, transform_indices = @transform_5, window_bounds = array<i64: 32, 32>}, {pipeline_mode = #tpu.pipeline_mode<synchronous>, transform_indices = @transform_6, window_bounds = array<i64: 1, 32>}, {transform_indices = @transform_7, window_bounds = array<i64: 1>}, {transform_indices = @transform_8, window_bounds = array<i64: 1, 64, 32>}]} {
    %c0_i32 = arith.constant 0 : i32
    %0 = arith.cmpi eq, %arg1, %c0_i32 : i32
    %1 = arith.extui %0 : i1 to i32
    %c0_i32_0 = arith.constant 0 : i32
    %c0_i32_1 = arith.constant 0 : i32
    %c0_i32_2 = arith.constant 0 : i32
    %2 = arith.cmpi ne, %1, %c0_i32_2 : i32
    scf.if %2 {
      %cst_25 = arith.constant 0.000000e+00 : f32
      %42 = vector.broadcast %cst_25 : f32 to vector<64x32xf32>
      %43 = arith.index_cast %c0_i32_0 : i32 to index
      %c0_26 = arith.constant 0 : index
      %c0_27 = arith.constant 0 : index
      %44 = vector.load %arg10[%43, %c0_26, %c0_27] : memref<1x64x32xf32, #tpu.memory_space<vmem>>, vector<1x64x32xf32>
      %45 = vector.shape_cast %44 : vector<1x64x32xf32> to vector<64x32xf32>
      %46 = vector.shape_cast %42 : vector<64x32xf32> to vector<1x64x32xf32>
      tpu.vector_store %arg10[%43, %c0_26, %c0_27], %46 {strides = array<i32>} : memref<1x64x32xf32, #tpu.memory_space<vmem>>, vector<1x64x32xf32>,
      %c0_i32_28 = arith.constant 0 : i32
      %c4_i32 = arith.constant 4 : i32
      %47 = arith.addi %c0_i32_28, %c4_i32 : i32
      %c1_i32 = arith.constant 1 : i32
      scf.for %arg12 = %c0_i32_28 to %47 step %c1_i32  : i32 {
        %c16_i32_30 = arith.constant 16 : i32
        %48 = arith.muli %arg12, %c16_i32_30 : i32
        %49 = tpu.assume_multiple %48, 16 : i32
        %c0_i32_31 = arith.constant 0 : i32
        %c0_i32_32 = arith.constant 0 : i32
        %50 = tpu.memref_slice %arg2[%c0_i32_1, %c0_i32_31, %c0_i32_32] : memref<1x64x32xf32, #tpu.memory_space<vmem>> -> memref<1x64x32xf32, #tpu.memory_space<vmem>>
        %51 = tpu.memref_squeeze %50 : memref<1x64x32xf32, #tpu.memory_space<vmem>> -> memref<64x32xf32, #tpu.memory_space<vmem>>
        %52 = arith.index_cast %49 : i32 to index
        %c0_33 = arith.constant 0 : index
        %53 = vector.load %51[%52, %c0_33] : memref<64x32xf32, #tpu.memory_space<vmem>>, vector<16x32xf32>
        %54 = arith.truncf %53 : vector<16x32xf32> to vector<16x32xbf16>
        %c0_34 = arith.constant 0 : index
        %c0_35 = arith.constant 0 : index
        %55 = vector.load %arg3[%c0_34, %c0_35] : memref<32x128xbf16, #tpu.memory_space<vmem>>, vector<32x128xbf16>
        %cst_36 = arith.constant dense<0.000000e+00> : vector<16x128xf32>
        %56 = tpu.matmul %54, %55, %cst_36 {dimension_numbers = #tpu.dot_dimension_numbers<[1], [0], [0], [1], [0, 0, 1, 1], [], []>} : vector<16x32xbf16>, vector<32x128xbf16>, vector<16x128xf32> -> vector<16x128xf32>
        %c0_37 = arith.constant 0 : index
        %c0_38 = arith.constant 0 : index
        %57 = vector.load %arg4[%c0_37, %c0_38] : memref<1x128xf32, #tpu.memory_space<vmem>>, vector<1x128xf32>
        %58 = vector.broadcast %57 : vector<1x128xf32> to vector<16x128xf32>
        %59 = arith.addf %56, %58 : vector<16x128xf32>
        %60 = arith.truncf %59 : vector<16x128xf32> to vector<16x128xbf16>
        %61 = arith.index_cast %49 : i32 to index
        %c0_39 = arith.constant 0 : index
        %62 = vector.load %arg11[%61, %c0_39] : memref<64x128xbf16, #tpu.memory_space<vmem>>, vector<16x128xbf16>
        tpu.vector_store %arg11[%61, %c0_39], %60 {strides = array<i32>} : memref<64x128xbf16, #tpu.memory_space<vmem>>, vector<16x128xbf16>,
      }
      %c4_i32_29 = arith.constant 4 : i32
    } else {
    }
    %c16_i32 = arith.constant 16 : i32
    %3 = arith.muli %arg1, %c16_i32 : i32
    %4 = tpu.assume_multiple %3, 16 : i32
    %c0_i32_3 = arith.constant 0 : i32
    %c0_i32_4 = arith.constant 0 : i32
    %c0_i32_5 = arith.constant 0 : i32
    %5 = tpu.memref_slice %arg2[%c0_i32_3, %c0_i32_4, %c0_i32_5] : memref<1x64x32xf32, #tpu.memory_space<vmem>> -> memref<1x64x32xf32, #tpu.memory_space<vmem>>
    %6 = tpu.memref_squeeze %5 : memref<1x64x32xf32, #tpu.memory_space<vmem>> -> memref<64x32xf32, #tpu.memory_space<vmem>>
    %7 = arith.index_cast %4 : i32 to index
    %c0 = arith.constant 0 : index
    %8 = vector.load %6[%7, %c0] : memref<64x32xf32, #tpu.memory_space<vmem>>, vector<16x32xf32>
    %9 = arith.truncf %8 : vector<16x32xf32> to vector<16x32xbf16>
    %c0_6 = arith.constant 0 : index
    %c0_7 = arith.constant 0 : index
    %10 = vector.load %arg5[%c0_6, %c0_7] : memref<32x160xbf16, #tpu.memory_space<vmem>>, vector<32x160xbf16>
    %cst = arith.constant dense<0.000000e+00> : vector<16x160xf32>
    %11 = tpu.matmul %9, %10, %cst {dimension_numbers = #tpu.dot_dimension_numbers<[1], [0], [0], [1], [0, 0, 1, 1], [], []>} : vector<16x32xbf16>, vector<32x160xbf16>, vector<16x160xf32> -> vector<16x160xf32>
    %c0_8 = arith.constant 0 : index
    %c0_9 = arith.constant 0 : index
    %12 = vector.load %arg6[%c0_8, %c0_9] : memref<1x160xf32, #tpu.memory_space<vmem>>, vector<1x160xf32>
    %13 = vector.broadcast %12 : vector<1x160xf32> to vector<16x160xf32>
    %14 = arith.addf %11, %13 : vector<16x160xf32>
    %15 = vector.extract_strided_slice %14 {offsets = [0, 0], sizes = [16, 128], strides = [1, 1]} : vector<16x160xf32> to vector<16x128xf32>
    %16 = arith.truncf %15 : vector<16x128xf32> to vector<16x128xbf16>
    %17 = vector.extract_strided_slice %14 {offsets = [0, 128], sizes = [16, 32], strides = [1, 1]} : vector<16x160xf32> to vector<16x32xf32>
    %c0_10 = arith.constant 0 : index
    %c0_11 = arith.constant 0 : index
    %18 = vector.load %arg11[%c0_10, %c0_11] : memref<64x128xbf16, #tpu.memory_space<vmem>>, vector<64x128xbf16>
    %cst_12 = arith.constant dense<0.000000e+00> : vector<16x64xf32>
    %19 = tpu.matmul %16, %18, %cst_12 {dimension_numbers = #tpu.dot_dimension_numbers<[1], [1], [0], [0], [0, 0, 1, 0], [], []>} : vector<16x128xbf16>, vector<64x128xbf16>, vector<16x64xf32> -> vector<16x64xf32>
    %cst_13 = arith.constant dense<0xFF800000> : vector<16xf32>
    %20 = vector.multi_reduction <maximumf>, %19, %cst_13 [1] : vector<16x64xf32> to vector<16xf32>
    %21 = vector.shape_cast %20 : vector<16xf32> to vector<16x1xf32>
    %22 = vector.broadcast %21 : vector<16x1xf32> to vector<16x64xf32>
    %23 = arith.subf %19, %22 : vector<16x64xf32>
    %24 = math.exp %23 : vector<16x64xf32>
    %cst_14 = arith.constant dense<0.000000e+00> : vector<16xf32>
    %25 = vector.multi_reduction <add>, %24, %cst_14 [1] : vector<16x64xf32> to vector<16xf32>
    %26 = vector.shape_cast %25 : vector<16xf32> to vector<16x1xf32>
    %27 = tpu.reciprocal %26 {approx = true} : vector<16x1xf32> -> vector<16x1xf32>
    %28 = vector.broadcast %27 : vector<16x1xf32> to vector<16x32xf32>
    %29 = arith.mulf %17, %28 : vector<16x32xf32>
    %30 = arith.truncf %29 : vector<16x32xf32> to vector<16x32xbf16>
    %31 = arith.truncf %24 : vector<16x64xf32> to vector<16x64xbf16>
    %c0_15 = arith.constant 0 : index
    %c0_16 = arith.constant 0 : index
    %c0_17 = arith.constant 0 : index
    %32 = vector.load %arg10[%c0_15, %c0_16, %c0_17] : memref<1x64x32xf32, #tpu.memory_space<vmem>>, vector<1x64x32xf32>
    %33 = vector.shape_cast %32 : vector<1x64x32xf32> to vector<64x32xf32>
    %cst_18 = arith.constant dense<0.000000e+00> : vector<64x32xf32>
    %34 = tpu.matmul %31, %30, %cst_18 {dimension_numbers = #tpu.dot_dimension_numbers<[0], [0], [1], [1], [0, 1, 1, 1], [], []>} : vector<16x64xbf16>, vector<16x32xbf16>, vector<64x32xf32> -> vector<64x32xf32>
    %35 = arith.addf %33, %34 : vector<64x32xf32>
    %c0_19 = arith.constant 0 : index
    %c0_20 = arith.constant 0 : index
    %c0_21 = arith.constant 0 : index
    %36 = vector.load %arg10[%c0_19, %c0_20, %c0_21] : memref<1x64x32xf32, #tpu.memory_space<vmem>>, vector<1x64x32xf32>
    %37 = vector.shape_cast %36 : vector<1x64x32xf32> to vector<64x32xf32>
    %38 = vector.shape_cast %35 : vector<64x32xf32> to vector<1x64x32xf32>
    tpu.vector_store %arg10[%c0_19, %c0_20, %c0_21], %38 {strides = array<i32>} : memref<1x64x32xf32, #tpu.memory_space<vmem>>, vector<1x64x32xf32>,
    %c3_i32 = arith.constant 3 : i32
    %39 = arith.cmpi eq, %arg1, %c3_i32 : i32
    %40 = arith.extui %39 : i1 to i32
    %c0_i32_22 = arith.constant 0 : i32
    %c0_i32_23 = arith.constant 0 : i32
    %c0_i32_24 = arith.constant 0 : i32
    %41 = arith.cmpi ne, %40, %c0_i32_24 : i32
    scf.if %41 {
      %c0_i32_25 = arith.constant 0 : i32
      %c4_i32 = arith.constant 4 : i32
      %42 = arith.addi %c0_i32_25, %c4_i32 : i32
      %c1_i32 = arith.constant 1 : i32
      scf.for %arg12 = %c0_i32_25 to %42 step %c1_i32  : i32 {
        %c16_i32_27 = arith.constant 16 : i32
        %43 = arith.muli %arg12, %c16_i32_27 : i32
        %44 = tpu.assume_multiple %43, 16 : i32
        %c0_i32_28 = arith.constant 0 : i32
        %c0_i32_29 = arith.constant 0 : i32
        %45 = tpu.memref_slice %arg10[%c0_i32_22, %c0_i32_28, %c0_i32_29] : memref<1x64x32xf32, #tpu.memory_space<vmem>> -> memref<1x64x32xf32, #tpu.memory_space<vmem>>
        %46 = tpu.memref_squeeze %45 : memref<1x64x32xf32, #tpu.memory_space<vmem>> -> memref<64x32xf32, #tpu.memory_space<vmem>>
        %47 = arith.index_cast %44 : i32 to index
        %c0_30 = arith.constant 0 : index
        %48 = vector.load %46[%47, %c0_30] : memref<64x32xf32, #tpu.memory_space<vmem>>, vector<16x32xf32>
        %49 = arith.truncf %48 : vector<16x32xf32> to vector<16x32xbf16>
        %c0_31 = arith.constant 0 : index
        %c0_32 = arith.constant 0 : index
        %50 = vector.load %arg7[%c0_31, %c0_32] : memref<32x32xbf16, #tpu.memory_space<vmem>>, vector<32x32xbf16>
        %cst_33 = arith.constant dense<0.000000e+00> : vector<16x32xf32>
        %51 = tpu.matmul %49, %50, %cst_33 {dimension_numbers = #tpu.dot_dimension_numbers<[1], [0], [0], [1], [0, 0, 1, 1], [], []>} : vector<16x32xbf16>, vector<32x32xbf16>, vector<16x32xf32> -> vector<16x32xf32>
        %c0_34 = arith.constant 0 : index
        %c0_35 = arith.constant 0 : index
        %52 = vector.load %arg8[%c0_34, %c0_35] : memref<1x32xf32, #tpu.memory_space<vmem>>, vector<1x32xf32>
        %53 = vector.broadcast %52 : vector<1x32xf32> to vector<16x32xf32>
        %54 = arith.addf %51, %53 : vector<16x32xf32>
        %c0_36 = arith.constant 0 : index
        %55 = memref.load %arg9[%c0_36] : memref<1xf32, #tpu.memory_space<smem>>
        %56 = vector.broadcast %55 : f32 to vector<16x32xf32>
        %57 = arith.mulf %56, %54 : vector<16x32xf32>
        %c0_i32_37 = arith.constant 0 : i32
        %c0_i32_38 = arith.constant 0 : i32
        %58 = tpu.memref_slice %arg2[%c0_i32_23, %c0_i32_37, %c0_i32_38] : memref<1x64x32xf32, #tpu.memory_space<vmem>> -> memref<1x64x32xf32, #tpu.memory_space<vmem>>
        %59 = tpu.memref_squeeze %58 : memref<1x64x32xf32, #tpu.memory_space<vmem>> -> memref<64x32xf32, #tpu.memory_space<vmem>>
        %60 = arith.index_cast %44 : i32 to index
        %c0_39 = arith.constant 0 : index
        %61 = vector.load %59[%60, %c0_39] : memref<64x32xf32, #tpu.memory_space<vmem>>, vector<16x32xf32>
        %62 = arith.addf %57, %61 : vector<16x32xf32>
        %c0_i32_40 = arith.constant 0 : i32
        %c0_i32_41 = arith.constant 0 : i32
        %63 = tpu.memref_slice %arg10[%c0_i32_22, %c0_i32_40, %c0_i32_41] : memref<1x64x32xf32, #tpu.memory_space<vmem>> -> memref<1x64x32xf32, #tpu.memory_space<vmem>>
        %64 = tpu.memref_squeeze %63 : memref<1x64x32xf32, #tpu.memory_space<vmem>> -> memref<64x32xf32, #tpu.memory_space<vmem>>
        %65 = arith.index_cast %44 : i32 to index
        %c0_42 = arith.constant 0 : index
        %66 = vector.load %64[%65, %c0_42] : memref<64x32xf32, #tpu.memory_space<vmem>>, vector<16x32xf32>
        tpu.vector_store %64[%65, %c0_42], %62 {strides = array<i32>} : memref<64x32xf32, #tpu.memory_space<vmem>>, vector<16x32xf32>,
      }
      %c4_i32_26 = arith.constant 4 : i32
    } else {
    }
    return
  }
  func.func @transform_0(%arg0: i32, %arg1: i32) -> (i32, i32, i32) {
    %c0_i32 = arith.constant 0 : i32
    %c0_i32_0 = arith.constant 0 : i32
    %c0_i32_1 = arith.constant 0 : i32
    return %arg0, %c0_i32, %c0_i32_0 : i32, i32, i32
  }
  func.func @transform_1(%arg0: i32, %arg1: i32) -> (i32, i32) {
    %c0_i32 = arith.constant 0 : i32
    %c0_i32_0 = arith.constant 0 : i32
    %c0_i32_1 = arith.constant 0 : i32
    return %c0_i32, %c0_i32_0 : i32, i32
  }
  func.func @transform_2(%arg0: i32, %arg1: i32) -> (i32, i32) {
    %c0_i32 = arith.constant 0 : i32
    %c0_i32_0 = arith.constant 0 : i32
    %c0_i32_1 = arith.constant 0 : i32
    return %c0_i32, %c0_i32_0 : i32, i32
  }
  func.func @transform_3(%arg0: i32, %arg1: i32) -> (i32, i32) {
    %c0_i32 = arith.constant 0 : i32
    %c0_i32_0 = arith.constant 0 : i32
    %c0_i32_1 = arith.constant 0 : i32
    return %c0_i32, %c0_i32_0 : i32, i32
  }
  func.func @transform_4(%arg0: i32, %arg1: i32) -> (i32, i32) {
    %c0_i32 = arith.constant 0 : i32
    %c0_i32_0 = arith.constant 0 : i32
    %c0_i32_1 = arith.constant 0 : i32
    return %c0_i32, %c0_i32_0 : i32, i32
  }
  func.func @transform_5(%arg0: i32, %arg1: i32) -> (i32, i32) {
    %c0_i32 = arith.constant 0 : i32
    %c0_i32_0 = arith.constant 0 : i32
    %c0_i32_1 = arith.constant 0 : i32
    return %c0_i32, %c0_i32_0 : i32, i32
  }
  func.func @transform_6(%arg0: i32, %arg1: i32) -> (i32, i32) {
    %c0_i32 = arith.constant 0 : i32
    %c0_i32_0 = arith.constant 0 : i32
    %c0_i32_1 = arith.constant 0 : i32
    return %c0_i32, %c0_i32_0 : i32, i32
  }
  func.func @transform_7(%arg0: i32, %arg1: i32) -> i32 {
    %c0_i32 = arith.constant 0 : i32
    %c0_i32_0 = arith.constant 0 : i32
    return %c0_i32 : i32
  }
  func.func @transform_8(%arg0: i32, %arg1: i32) -> (i32, i32, i32) {
    %c0_i32 = arith.constant 0 : i32
    %c0_i32_0 = arith.constant 0 : i32
    %c0_i32_1 = arith.constant 0 : i32
    return %arg0, %c0_i32, %c0_i32_0 : i32, i32, i32
  }
}

</mosaic_0001>

<bundles_post_ra>
// kernel: tpu_custom_call.1
= control target key start
LH: loop header
LB: loop body
LE: loop exit
PB: predicated region body
PF: predicated region fallthrough
CT: control target
= control target key end

     0   :  { %s1157_s29 = smov 0   ;;  %s1159_s30 = smov 0   ;;  %s1325_s0 = inlined_call_operand.vmem [shape: f32[2,64,32], index: 0, kind: input, shape index: {}]   ;;  %s1326_s1 = inlined_call_operand.vmem [shape: bf16[32,128], index: 1, kind: input, shape index: {}]   ;;  %s1327_s2 = inlined_call_operand.vmem [shape: f32[1,128], index: 2, kind: input, shape index: {}]   ;;  %s1328_s3 = inlined_call_operand.vmem [shape: bf16[32,160], index: 3, kind: input, shape index: {}]   ;;  %s1329_s4 = inlined_call_operand.vmem [shape: f32[1,160], index: 4, kind: input, shape index: {}]   ;;  %s1330_s5 = inlined_call_operand.vmem [shape: bf16[32,32], index: 5, kind: input, shape index: {}]   ;;  %s1331_s6 = inlined_call_operand.vmem [shape: f32[1,32], index: 6, kind: input, shape index: {}]   ;;  %s1332_s7 = inlined_call_operand.<no memory space> [shape: f32[1], index: 7, kind: input, shape index: {}]   ;;  %s1333_s8 = inlined_call_operand.vmem [shape: f32[2,64,32], index: 8, kind: output, shape index: {}]  }
   0x1   :  { %13 = sst [smem:[#allocation3]] %s1332_s7  ;;  %s1161_s9 = smov 0  }
   0x2   :  { %s1163_s10 = smov 0   ;;  %s1165_s11 = smov 0  }
   0x3 LB: > { %s28_s7 = sadd.s32 1, %s1083_s9  ;;  %s31_s12 = sadd.s32 1, %s1087_s10  ;;  %s1091_s11 = sphi %s1165_s11, %s19_s11   ;;  %s1087_s10 = sphi %s1163_s10, %s1337_s10   ;;  %s1083_s9 = sphi %s1161_s9, %s1336_s9   ;;  %s1079_s30 = sphi %s1159_s30, %s1335_s30   ;;  %s1075_s29 = sphi %s1157_s29, %s1334_s29  }
   0x4   : > { %p29_p0 = scmp.ge.s32.totalorder %s28_s7, 4  ;;  %p877_p1 = scmp.ge.s32.totalorder %s1091_s11, 1 }
   0x5   : > { %p275_p2 = scmp.lt.s32.totalorder %s1091_s11, 9 }
   0x6   : > { %s1339_s7 = smov (%p29_p0, %s28_s7), 0  ;;  %s1341_s12 = smov (!%p29_p0, %s31_s12), %s1087_s10 }
   0x7   : > { %p276_p3 = pnand %p877_p1, %p275_p2  ;;  %p33_p4 = scmp.ge.s32.totalorder %s1341_s12, 2 }
   0x8   : > { %p309_p5 = scmp.lt.s32.totalorder (!%p276_p3), %s1079_s30, 1  ;;  %p882_p6 = scmp.ne.s32.totalorder (!%p276_p3), %s1075_s29, 0 }
   0x9   : > { %s1343_s12 = smov (%p33_p4, %s1341_s12), 0  ;;  %279 = sbr.rel (%p276_p3) target bundleno = 1470 (0x5be), region = 52 }
  0x10   : > { %s1345_s30 = smov (!%p309_p5, %s1079_s30), 1  ;;  %323 = sbr.rel (%p882_p6) target bundleno = 251 (0xfb), region = 56 }
  0x11   : > { %s907_s13 = sshll.u32 %s1345_s30, 6  ;;  %vm324_vm0 = vcmask (!%p882_p6), 261120   ;;  %v1101_v0 = vmov (!%p882_p6), 0.0   ;;  %s1216_s20 = smov (!%p882_p6), 0  }
  0x12   : > { %s1192_s16 = scalar_lea.vmem %s1325_s0, %s907_s13  ;;  %s1197_s19 = scalar_lea.vmem %s1333_s8, %s907_s13 }
  0x13   : > { %325 = vst.msk [vmem:[%s1197_s19] sm:$0xff] (!%p882_p6), %vm324_vm0, %v1101_v0  ;;  %326 = vst.msk [vmem:[%s1197_s19 + $0x8] sm:$0xff] (!%p882_p6), %vm324_vm0, %v1101_v0 }
  0x14   : > { %327 = vst.msk [vmem:[%s1197_s19 + $0x10] sm:$0xff] (!%p882_p6), %vm324_vm0, %v1101_v0  ;;  %328 = vst.msk [vmem:[%s1197_s19 + $0x18] sm:$0xff] (!%p882_p6), %vm324_vm0, %v1101_v0 }
  0x15   : > { %329 = vst.msk [vmem:[%s1197_s19 + $0x20] sm:$0xff] (!%p882_p6), %vm324_vm0, %v1101_v0  ;;  %330 = vst.msk [vmem:[%s1197_s19 + $0x28] sm:$0xff] (!%p882_p6), %vm324_vm0, %v1101_v0 }
  0x16   : > { %331 = vst.msk [vmem:[%s1197_s19 + $0x30] sm:$0xff] (!%p882_p6), %vm324_vm0, %v1101_v0  ;;  %332 = vst.msk [vmem:[%s1197_s19 + $0x38] sm:$0xff] (!%p882_p6), %vm324_vm0, %v1101_v0 }
  0x17 LB: >> { %v1027_v1 = vld [vmem:[%s1326_s1] sm:$0xff]   ;;  %v1102_v2 = vmov 0.0   ;;  %v1028_v3 = vld [vmem:[%s1326_s1 + $0x8] sm:$0xff]   ;;  %vm1103_vm1 = vmmov 0   ;;  %s883_s25 = sshll.u32 %s1095_s20, 4  ;;  %s338_s20 = sadd.s32 1, %s1095_s20   ;;  %s1095_s20 = sphi %s1216_s20, %s338_s20  }
  0x18   : >> { %925 = vmatprep.subr.bf16.mxu0 %v1102_v2  ;;  %929 = vmatprep.mubr.msk.bf16.mxu0 %vm1103_vm1, %v1102_v2  ;;  %s340_s26 = scalar_lea.vmem %s1192_s16, %s883_s25  ;;  %s412_s27 = sshra.s32 %s883_s25, 4  ;;  %v884_v7 = vld [vmem:[%s1327_s2] ss:$0 sm:$0xff] }
  0x19   : >> { %926 = vmatpush3.bf16.msra.mxu0 %v1027_v1  ;;  %v341_v4 = vld [vmem:[%s340_s26] sm:$0xff]  ;;  %v342_v5 = vld [vmem:[%s340_s26 + $0x8] sm:$0xff]  ;;  %s888_s13 = sshll.u32 %s412_s27, 3  ;;  %p335_p7 = scmp.ge.s32.totalorder %s338_s20, 4  }
  0x1a   : >> { %927 = vmatprep.subr.bf16.mxu0 %v1102_v2  ;;  %v343_v6 = vpack.c.bf16 %v342_v5, %v341_v4  ;;  %s415_s14 = scalar_lea.vmem [#allocation2], %s888_s13 }
  0x1d   : >> { %928 = vmatpush3.bf16.msra.mxu0 %v1028_v3 }
  0x20   : >> { %930 = vmatmul.mubr.msk.bf16.vlgmr.msra.gmra.mrb[0].mxu0 %vm324_vm0, %v343_v6 }
  0xf3   : >> { %v404_v8 = vpop.f32.mrb[0].mxu0 }
  0xf4   : >> { %v931_v9 = vpop.f32.mrb[1].mxu0  ;;  %v405_v11 = vadd.f32 %v884_v7, %v404_v8  ;;  %337 = sbr.rel (!%p335_p7) target bundleno = 23 (0x17), region = 109 }
  0xf5   : >> { %v407_v10 = vpop.f32.mrb[2].mxu0 }
  0xf6   : >> { %v408_v12 = vadd.f32 %v884_v7, %v407_v10  ;;  %v932_v13 = vpop.f32.mrb[3].mxu0 }
  0xf8   : >> { %v411_v14 = vpack.c.bf16 %v408_v12, %v405_v11 }
  0xfa   : >> { %416 = vst [vmem:[%s415_s14] sm:$0xff] %v411_v14 }
  0xfb PF: > { %v1029_v15 = vld [vmem:[%s1328_s3 + $0x4] ss:$8 sps:$4 sm:$0xff]   ;;  %s889_s18 = sshll.u32 %s1075_s29, 4  ;;  %v1031_v16 = vld [vmem:[%s1328_s3] ss:$8 sps:$4 sm:$0xff]   ;;  %v1104_v17 = vmov 0   ;;  %v428_v28 = vlaneseq }
  0xfc   : > { %494 = vmatprep.mubr.bf16.mxu0 %v1104_v17  ;;  %s418_s23 = scalar_lea.vmem %s1192_s16, %s889_s18  ;;  %462 = vmatprep.subr.bf16.mxu0 %v1029_v15  ;;  %v1032_v18 = vld [vmem:[%s1328_s3 + $0x14] ss:$8 sps:$4 sm:$0xff]   ;;  %v1034_v19 = vld [vmem:[%s1328_s3 + $0x10] ss:$8 sps:$4 sm:$0xff]   ;;  %v1105_v20 = vmov 0.0   ;;  %vm458_vm2 = vcmask 261120  }
  0xfd   : > { %933 = vmatprep.subr.bf16.mxu1 %v1105_v20  ;;  %463 = vmatpush1.bf16.msra.mxu0 %v1031_v16  ;;  %v419_v21 = vld [vmem:[%s418_s23] sm:$0xff]  ;;  %v420_v22 = vld [vmem:[%s418_s23 + $0x8] sm:$0xff]  ;;  %vm1106_vm3 = vmmov 0   ;;  %v429_v29 = vshrl.u32 %v428_v28, 7  ;;  %vm551_vm4 = vcmask 523264   ;;  %vm600_vm5 = vcmask 130048  }
  0xfe   : > { %464 = vmatprep.subr.bf16.mxu0 %v1032_v18  ;;  %v421_v24 = vpack.c.bf16 %v420_v22, %v419_v21  ;;  %941 = vmatprep.mubr.msk.bf16.mxu1 %vm1106_vm3, %v1105_v20  ;;  %v426_v31 = vld [vmem:[%s1329_s4] sm:$0x3]  ;;  %v577_v14 = vld [vmem:[%s1197_s19 + $0x8] sm:$0xff]  ;;  %p899_p8 = scmp.ne.s32.totalorder %s1075_s29, 3 }
  0xff   : > { %v430_v30 = vsub.s32 0, %v429_v29  ;;  %v434_v60 = vsub.s32 1, %v429_v29  ;;  %v578_v8 = vld [vmem:[%s1197_s19 + $0x10] sm:$0xff]  ;;  %v576_v9 = vld [vmem:[%s1197_s19] sm:$0xff]  ;;  %v579_v11 = vld [vmem:[%s1197_s19 + $0x18] sm:$0xff]  ;;  %s1287_s30 = smov (!%p899_p8), 0  }
 0x100   : > { %v580_v21 = vld [vmem:[%s1197_s19 + $0x20] sm:$0xff] }
 0x101   : > { %v506_v23 = vld [vmem:[#allocation2] sm:$0xff]  ;;  %465 = vmatpush1.bf16.msra.mxu0 %v1034_v19  ;;  %v507_v25 = vld [vmem:[#allocation2 + $0x8] sm:$0xff]  ;;  %v508_v26 = vld [vmem:[#allocation2 + $0x10] sm:$0xff]  ;;  %v431_v32 = vrot.slane %v426_v31, %v430_v30  ;;  %v435_v61 = vrot.slane %v426_v31, %v434_v60 }
 0x102   : > { %934 = vmatpush3.bf16.xpose.msra.mxu1 %v506_v23  ;;  %v509_v27 = vld [vmem:[#allocation2 + $0x18] sm:$0xff] }
 0x103   : > { %935 = vmatprep.subr.bf16.mxu1 %v1105_v20  ;;  %v583_v23 = vld [vmem:[%s1197_s19 + $0x38] sm:$0xff] }
 0x104   : > { %894 = vmatmul.mubr.msk.bf16.vlgmr.msra.gmra.mrb[0].mxu0 %vm458_vm2, %v421_v24 }
 0x10a   : > { %936 = vmatpush3.bf16.xpose.msra.mxu1 %v507_v25 }
 0x10b   : > { %937 = vmatprep.subr.bf16.mxu1 %v1105_v20 }
 0x112   : > { %938 = vmatpush3.bf16.xpose.msra.mxu1 %v508_v26  ;;  %v581_v26 = vld [vmem:[%s1197_s19 + $0x28] sm:$0xff] }
 0x113   : > { %939 = vmatprep.subr.bf16.mxu1 %v1105_v20  ;;  %v582_v20 = vld [vmem:[%s1197_s19 + $0x30] sm:$0xff] }
 0x11a   : > { %940 = vmatpush3.bf16.xpose.msra.mxu1 %v509_v27 }
 0x1d7   : > { %v496_v33 = vpop.f32.mrb[0].mxu0 }
 0x1d8   : > { %v498_v34 = vpop.f32.mrb[1].mxu0  ;;  %v497_v36 = vadd.f32 %v496_v33, %v431_v32 }
 0x1d9   : > { %v500_v35 = vpop.f32.mrb[2].mxu0  ;;  %v499_v63 = vadd.f32 %v498_v34, %v435_v61 }
 0x1da   : > { %v501_v37 = vadd.f32 %v500_v35, %v431_v32  ;;  %v502_v38 = vpop.f32.mrb[3].mxu0 }
 0x1db   : > { %v503_v0 = vadd.f32 %v502_v38, %v435_v61 }
 0x1dc   : > { %v505_v39 = vpack.c.bf16 %v501_v37, %v497_v36 }
 0x1de   : > { %942 = vmatmul.mubr.bf16.vlgmr.msra.gmra.mrb[0].mxu1 %v505_v39 }
 0x2b1   : > { %v544_v40 = vpop.f32.mrb[0].mxu1 }
 0x2b2   : > { %v943_v41 = vpop.f32.mrb[1].mxu1  ;;  %v552_v42 = vsel %vm551_vm4, %v544_v40, -inf }
 0x2b3   : > { %553 = vmax.xlane.f32.xlu0 %v552_v42  ;;  %v547_v43 = vpop.f32.mrb[2].mxu1 }
 0x2b4   : > { %v944_v44 = vpop.f32.mrb[3].mxu1  ;;  %v555_v45 = vsel %vm551_vm4, %v547_v43, -inf }
 0x2b7   : > { %556 = vmax.xlane.f32.xlu0 %v555_v45 }
 0x340   : > { %v554_v46 = vpop.xlane.xlu0 %553 }
 0x341   : > { %v558_v47 = vsub.f32 %v544_v40, %v554_v46 }
 0x343   : > { %v560_v48 = vmul.f32 1.442695, %v558_v47 }
 0x344   : > { %v557_v49 = vpop.xlane.xlu0 %556 }
 0x345   : > { %1035 = vpow2.f32 %v560_v48  ;;  %v559_v50 = vsub.f32 %v547_v43, %v557_v49 }
 0x347   : > { %v562_v51 = vmul.f32 1.442695, %v559_v50 }
 0x349   : > { %1037 = vpow2.f32 %v562_v51 }
 0x34f   : > { %v1036_v52 = vpop.eup %1035 }
 0x350   : > { %v564_v53 = vsel %vm551_vm4, %v1036_v52, 0.0 }
 0x351   : > { %565 = vadd.xlane.f32.xlu1 %v564_v53 }
 0x353   : > { %v1038_v54 = vpop.eup %1037 }
 0x354   : > { %v567_v55 = vsel %vm551_vm4, %v1038_v54, 0.0  ;;  %v575_v56 = vpack.c.bf16 %v1038_v54, %v1036_v52 }
 0x355   : > { %568 = vadd.xlane.f32.xlu1 %v567_v55 }
 0x356   : > { %584 = vxpose.xlu0.c.b16.start.end [1/1] (short) (narrow) %v575_v56, 64 }
 0x3bc   : > { %v592_v57 = vpop.trf.xlu0 }
 0x3bd   : > { %947 = vmatprep.mubr.msk.bf16.mxu0 %vm600_vm5, %v592_v57 }
 0x3c0   : > { %v593_v4 = vpop.trf.xlu0 }
 0x3c4   : > { %v594_v6 = vpop.trf.xlu0 }
 0x3c8   : > { %v595_v7 = vpop.trf.xlu0 }
 0x3de   : > { %v566_v58 = vpop.xlane.xlu1 %565 }
 0x3df   : > { %1039 = vrcp.f32 %v566_v58 }
 0x3e2   : > { %v569_v59 = vpop.xlane.xlu1 %568 }
 0x3e3   : > { %1041 = vrcp.f32 %v569_v59 }
 0x3e9   : > { %v1040_v62 = vpop.eup %1039 }
 0x3ea   : > { %v572_v2 = vmul.f32 %v1040_v62, %v499_v63 }
 0x3ed   : > { %v1042_v1 = vpop.eup %1041 }
 0x3ee   : > { %v573_v3 = vmul.f32 %v1042_v1, %v503_v0 }
 0x3f0   : > { %v574_v5 = vpack.c.bf16 %v573_v3, %v572_v2 }
 0x3f2   : > { %945 = vmatprep.subr.bf16.mxu0 %v574_v5 }
 0x3f3   : > { %946 = vmatpush3.bf16.msra.mxu0 %v574_v5 }
 0x3f6   : > { %948 = vmatmul.mubr.msk.bf16.vlgmr.msra.gmra.mrb[4].mxu0 %vm600_vm5, %v593_v4 }
 0x3f7   : > { %951 = vmatprep.mubr.msk.bf16.mxu0 %vm600_vm5, %v594_v6 }
 0x3fe   : > { %952 = vmatmul.mubr.msk.bf16.gmra.mrb[8].mxu0 %vm600_vm5, %v595_v7 }
 0x4c9   : > { %v949_v10 = vpop.f32.mrb[4].mxu0 }
 0x4ca   : > { %v680_v12 = vadd.f32 %v949_v10, %v578_v8  ;;  %v647_v13 = vpop.f32.mrb[5].mxu0 }
 0x4cb   : > { %v678_v15 = vadd.f32 %v647_v13, %v576_v9  ;;  %v950_v16 = vpop.f32.mrb[6].mxu0 }
 0x4cc   : > { %688 = vst.msk [vmem:[%s1197_s19 + $0x10] sm:$0xff] %vm458_vm2, %v680_v12  ;;  %v681_v17 = vadd.f32 %v950_v16, %v579_v11  ;;  %v650_v18 = vpop.f32.mrb[7].mxu0 }
 0x4cd   : > { %686 = vst.msk [vmem:[%s1197_s19] sm:$0xff] %vm458_vm2, %v678_v15  ;;  %v679_v19 = vadd.f32 %v650_v18, %v577_v14 }
 0x4ce   : > { %689 = vst.msk [vmem:[%s1197_s19 + $0x18] sm:$0xff] %vm458_vm2, %v681_v17 }
 0x4cf   : > { %687 = vst.msk [vmem:[%s1197_s19 + $0x8] sm:$0xff] %vm458_vm2, %v679_v19 }
 0x4d1   : > { %v953_v22 = vpop.f32.mrb[8].mxu0  ;;  %697 = sbr.rel (%p899_p8) target bundleno = 1470 (0x5be), region = 67 }
 0x4d2   : > { %v684_v24 = vadd.f32 %v953_v22, %v582_v20  ;;  %v663_v25 = vpop.f32.mrb[9].mxu0 }
 0x4d3   : > { %v682_v27 = vadd.f32 %v663_v25, %v580_v21  ;;  %v954_v28 = vpop.f32.mrb[10].mxu0 }
 0x4d4   : > { %692 = vst.msk [vmem:[%s1197_s19 + $0x30] sm:$0xff] %vm458_vm2, %v684_v24  ;;  %v685_v29 = vadd.f32 %v954_v28, %v583_v23  ;;  %v666_v30 = vpop.f32.mrb[11].mxu0 }
 0x4d5   : > { %690 = vst.msk [vmem:[%s1197_s19 + $0x20] sm:$0xff] %vm458_vm2, %v682_v27  ;;  %v683_v31 = vadd.f32 %v666_v30, %v581_v26 }
 0x4d6   : > { %693 = vst.msk [vmem:[%s1197_s19 + $0x38] sm:$0xff] %vm458_vm2, %v685_v29 }
 0x4d7   : > { %691 = vst.msk [vmem:[%s1197_s19 + $0x28] sm:$0xff] %vm458_vm2, %v683_v31 }
 0x4d8 LB: >> { %v1043_v32 = vld [vmem:[%s1330_s5] sm:$0xff]   ;;  %v1107_v33 = vmov 0.0   ;;  %v1044_v34 = vld [vmem:[%s1330_s5 + $0x8] sm:$0xff]   ;;  %vm1108_vm6 = vmmov 0   ;;  %s900_s17 = sshll.u32 %s1099_s30, 4  ;;  %s776_s21 = sld [smem:[#allocation3]]  ;;  %s1099_s30 = sphi %s1287_s30, %s703_s30  }
 0x4d9   : >> { %955 = vmatprep.subr.bf16.mxu0 %v1107_v33  ;;  %959 = vmatprep.mubr.msk.bf16.mxu0 %vm1108_vm6, %v1107_v33  ;;  %s705_s18 = scalar_lea.vmem %s1197_s19, %s900_s17  ;;  %v901_v38 = vld [vmem:[%s1331_s6] ss:$0 sm:$0xff]  ;;  %s780_s24 = scalar_lea.vmem %s1192_s16, %s900_s17 }
 0x4da   : >> { %956 = vmatpush3.bf16.msra.mxu0 %v1043_v32  ;;  %v781_v43 = vld [vmem:[%s780_s24] sm:$0xff]  ;;  %v782_v48 = vld [vmem:[%s780_s24 + $0x8] sm:$0xff]  ;;  %s703_s30 = sadd.s32 1, %s1099_s30  }
 0x4db   : >> { %957 = vmatprep.subr.bf16.mxu0 %v1107_v33  ;;  %p700_p9 = scmp.ge.s32.totalorder %s703_s30, 4  }
 0x4de   : >> { %v706_v35 = vld [vmem:[%s705_s18] sm:$0xff]  ;;  %v707_v36 = vld [vmem:[%s705_s18 + $0x8] sm:$0xff]  ;;  %958 = vmatpush3.bf16.msra.mxu0 %v1044_v34  ;;  %v777_v40 = vstv %s776_s21 }
 0x4df   : >> { %v708_v37 = vpack.c.bf16 %v707_v36, %v706_v35 }
 0x4e1   : >> { %960 = vmatmul.mubr.msk.bf16.vlgmr.msra.gmra.mrb[0].mxu0 %vm458_vm2, %v708_v37 }
 0x5b4   : >> { %v769_v39 = vpop.f32.mrb[0].mxu0 }
 0x5b5   : >> { %v770_v41 = vadd.f32 %v901_v38, %v769_v39  ;;  %v961_v42 = vpop.f32.mrb[1].mxu0 }
 0x5b6   : >> { %v772_v44 = vpop.f32.mrb[2].mxu0 }
 0x5b7   : >> { %v778_v45 = vmul.f32 %v777_v40, %v770_v41  ;;  %v773_v46 = vadd.f32 %v901_v38, %v772_v44  ;;  %v962_v47 = vpop.f32.mrb[3].mxu0  ;;  %702 = sbr.rel (!%p700_p9) target bundleno = 1240 (0x4d8), region = 120 }
 0x5b9   : >> { %v783_v49 = vadd.f32 %v781_v43, %v778_v45  ;;  %v779_v50 = vmul.f32 %v777_v40, %v773_v46 }
 0x5bb   : >> { %785 = vst.msk [vmem:[%s705_s18] sm:$0xff] %vm458_vm2, %v783_v49  ;;  %v784_v51 = vadd.f32 %v782_v48, %v779_v50 }
 0x5bd   : >> { %786 = vst.msk [vmem:[%s705_s18 + $0x8] sm:$0xff] %vm458_vm2, %v784_v51 }
 0x5be PF: > { %s19_s11 = sadd.s32 1, %s1091_s11   ;;  %s1334_s29 = smov %s1083_s9 }
 0x5bf   : > { %p16_p10 = scmp.ge.s32.totalorder %s19_s11, 10   ;;  %s1335_s30 = smov %s1087_s10 }
 0x5c0   : > { %s1336_s9 = smov %s1339_s7  ;;  %s1337_s10 = smov %s1343_s12 }
 0x5c1   :  { %18 = sbr.rel (!%p16_p10) target bundleno = 3 (0x3), region = 131 }

</bundles_post_ra>
